<compile_context>
chip_gen: v7x
topology: tpu7x:2x2x1
jax: 0.10.0
libtpu: 0.0.40
codegen_flags: <defaults>
</compile_context>

<pallas_src>
import jax
import jax.numpy as jnp
from jax.experimental import pallas as pl
from jax.experimental.pallas import tpu as pltpu


def _bnch_kernel(x_ref, ws_ref, rb_ref, out_ref):
    """One (batch, spatial-tile) step: out = ws @ x + row_bias, f32 accumulation."""
    x = x_ref[0]                                    # (C, thw)  native dtype, lane-dense
    ws = ws_ref[0]                                  # (K, C)    folded text operand
    rb = rb_ref[0]                                  # (K, 1)    f32 per-row bias
    acc = jnp.dot(ws, x, preferred_element_type=jnp.float32) + rb
    out_ref[0] = acc.astype(out_ref.dtype)


def _pick_tile(hw_pad, c, k, itemsize):
    """Largest multiple-of-128 divisor of hw_pad under a VMEM double-buffer budget."""
    budget = 20 * 1024 * 1024                       # x-block + out-block, double-buffered
    per_lane = 2 * (c + k) * itemsize
    max_thw = max(128, budget // max(per_lane, 1))
    cap = max(128, min(2048, (max_thw // 128) * 128))
    n = hw_pad // 128
    best = 128
    for d in range(1, n + 1):
        if n % d == 0 and d * 128 <= cap:
            best = d * 128
    return best


def bn_contrastive_head(x, w, params, *, training=False, eps=1e-5):
    """x: (B, C, H, W), w: (B, K, C) -> (B, K, H, W). Matches BNContrastiveHead.forward."""
    B, C, H, W = x.shape
    Bw, K, Cw = w.shape
    assert Bw == B and Cw == C
    HW = H * W
    out_dtype = x.dtype
    f32 = jnp.float32

    if training:
        # Training-mode BN normalizes with biased batch statistics over (B, H, W).
        # This is a second full read of x in XLA before the kernel (unavoidable two-pass BN).
        # TODO(synk): running_mean/running_var momentum updates are module state, not kernel outputs.
        xf = x.astype(f32)
        mean = jnp.mean(xf, axis=(0, 2, 3))
        var = jnp.var(xf, axis=(0, 2, 3))
    else:
        mean = params['running_mean']
        var = params['running_var']

    # Fold BN affine + exp(logit_scale) into per-channel (scale, shift).
    ls = jnp.exp(jnp.asarray(params['logit_scale'], f32))
    gamma = jnp.asarray(params['bn_weight'], f32)
    beta = jnp.asarray(params['bn_bias'], f32)
    inv_std = jax.lax.rsqrt(jnp.asarray(var, f32) + eps)
    scale = gamma * inv_std * ls                                            # (C,)
    shift = (beta - jnp.asarray(mean, f32) * gamma * inv_std) * ls          # (C,)

    # Hoisted text-branch work (tiny O(B*K*C)): L2-normalize w, fold per-channel scale
    # into the matmul operand, turn the per-channel shift into a per-row bias.
    wf = w.astype(f32)
    inv_n = jax.lax.rsqrt(jnp.maximum(jnp.sum(wf * wf, axis=-1, keepdims=True), 1e-24))
    wn = wf * inv_n                                                         # (B, K, C)
    ws = (wn * scale[None, None, :]).astype(out_dtype)                      # (B, K, C) in x dtype
    rb = (jnp.sum(wn * shift[None, None, :], axis=-1, keepdims=True)
          + jnp.asarray(params['bias'], f32).reshape(1, 1, 1))              # (B, K, 1) f32

    # Activations: free reshape to (B, C, HW), native dtype (no wrapper upcast).
    x2 = x.reshape(B, C, HW)
    HW_pad = ((HW + 127) // 128) * 128
    if HW_pad != HW:
        # Lane-align H*W; padded columns produce garbage (= row bias) and are sliced off.
        x2 = jnp.pad(x2, ((0, 0), (0, 0), (0, HW_pad - HW)))

    itemsize = jnp.dtype(out_dtype).itemsize
    thw = _pick_tile(HW_pad, C, K, itemsize)

    out = pl.pallas_call(
        _bnch_kernel,
        out_shape=jax.ShapeDtypeStruct((B, K, HW_pad), out_dtype),
        grid=(B, HW_pad // thw),
        in_specs=[
            pl.BlockSpec((1, C, thw), lambda b, j: (b, 0, j)),   # activations (native dtype)
            pl.BlockSpec((1, K, C), lambda b, j: (b, 0, 0)),     # folded text operand
            pl.BlockSpec((1, K, 1), lambda b, j: (b, 0, 0)),     # per-row bias (f32)
        ],
        out_specs=pl.BlockSpec((1, K, thw), lambda b, j: (b, 0, j)),
        compiler_params=pltpu.CompilerParams(
            dimension_semantics=("parallel", "parallel"),
            vmem_limit_bytes=48 * 1024 * 1024),
    )(x2, ws, rb)

    if HW_pad != HW:
        out = out[:, :, :HW]
    return out.reshape(B, K, H, W)


def _reference(x, w, params, mean, var, eps=1e-5):
    """Pure-JAX mirror of the PyTorch forward, for verification."""
    inv_std = 1.0 / jnp.sqrt(var + eps)
    xn = (x - mean[None, :, None, None]) * inv_std[None, :, None, None]
    xn = xn * params['bn_weight'][None, :, None, None] + params['bn_bias'][None, :, None, None]
    wn = w / jnp.maximum(jnp.linalg.norm(w, axis=-1, keepdims=True), 1e-12)
    out = jnp.einsum('bchw,bkc->bkhw', xn, wn)
    return out * jnp.exp(params['logit_scale']) + params['bias'][0]


if __name__ == "__main__":
    B, C, H, W, K = 2, 32, 16, 16, 8     # embed_dims=32, 8 text queries

    key = jax.random.PRNGKey(0)
    kx, kw, kx2, k1, k2, k3, k4 = jax.random.split(key, 7)
    params = {
        'bn_weight': 1.0 + 0.1 * jax.random.normal(k1, (C,), jnp.float32),
        'bn_bias': 0.1 * jax.random.normal(k2, (C,), jnp.float32),
        'running_mean': 0.2 * jax.random.normal(k3, (C,), jnp.float32),
        'running_var': jnp.abs(1.0 + 0.2 * jax.random.normal(k4, (C,), jnp.float32)),
        'logit_scale': jnp.float32(-1.0),                 # nn.Parameter(-1.0 * ones([]))
        'bias': jnp.full((1,), -10.0, jnp.float32),       # nn.Parameter(tensor([-10.0]))
    }
    x = jax.random.normal(kx, (B, C, H, W), jnp.float32)
    w = jax.random.normal(kw, (B, K, C), jnp.float32)

    # 1) Eval-mode BN (running statistics), f32 activations.
    out = jax.block_until_ready(bn_contrastive_head(x, w, params, training=False))
    assert out.shape == (B, K, H, W), out.shape
    ref = _reference(x, w, params, params['running_mean'], params['running_var'])
    err = float(jnp.max(jnp.abs(out - ref)))
    if not err < 2e-3:
        raise AssertionError(f"eval-mode kernel/reference mismatch: max abs err {err}")

    # 2) Training-mode BN (batch statistics computed in glue, same kernel).
    out_t = jax.block_until_ready(bn_contrastive_head(x, w, params, training=True))
    mean_b = jnp.mean(x, axis=(0, 2, 3))
    var_b = jnp.var(x, axis=(0, 2, 3))
    ref_t = _reference(x, w, params, mean_b, var_b)
    err_t = float(jnp.max(jnp.abs(out_t - ref_t)))
    if not err_t < 2e-3:
        raise AssertionError(f"train-mode kernel/reference mismatch: max abs err {err_t}")

    # 3) bf16 activations/embeddings: native-dtype streaming, bf16 output, f32 accumulation.
    xb = x.astype(jnp.bfloat16)
    wb = w.astype(jnp.bfloat16)
    out_b = jax.block_until_ready(bn_contrastive_head(xb, wb, params, training=False))
    assert out_b.dtype == jnp.bfloat16, out_b.dtype
    ref_b = _reference(xb.astype(jnp.float32), wb.astype(jnp.float32), params,
                       params['running_mean'], params['running_var'])
    err_b = float(jnp.max(jnp.abs(out_b.astype(jnp.float32) - ref_b)))
    if not err_b < 0.25:
        raise AssertionError(f"bf16 kernel/reference mismatch: max abs err {err_b}")

    # 4) Non-128-multiple spatial size (exercises the lane-padding path, e.g. 10x10=100).
    Hs, Ws = 10, 10
    xs = jax.random.normal(kx2, (B, C, Hs, Ws), jnp.float32)
    out_s = jax.block_until_ready(bn_contrastive_head(xs, w, params, training=False))
    assert out_s.shape == (B, K, Hs, Ws), out_s.shape
    ref_s = _reference(xs, w, params, params['running_mean'], params['running_var'])
    err_s = float(jnp.max(jnp.abs(out_s - ref_s)))
    if not err_s < 2e-3:
        raise AssertionError(f"padded-HW kernel/reference mismatch: max abs err {err_s}")

    print("KERNEL_OK")
</pallas_src>

<mosaic_0001>
module attributes {stable_mosaic.version = 11 : i64} {
  func.func @_bnch_kernel(%arg0: i32, %arg1: i32, %arg2: memref<1x32x256xf32, #tpu.memory_space<vmem>>, %arg3: memref<1x8x32xf32, #tpu.memory_space<vmem>>, %arg4: memref<1x8x1xf32, #tpu.memory_space<vmem>>, %arg5: memref<1x8x256xf32, #tpu.memory_space<vmem>>) attributes {dimension_semantics = [#tpu.dimension_semantics<parallel>, #tpu.dimension_semantics<parallel>], iteration_bounds = array<i64: 2, 1>, scalar_prefetch = 0 : i64, scratch_operands = 0 : i64, tpu.core_type = #tpu.core_type<tc>, window_params = [{transform_indices = @transform_0, window_bounds = array<i64: 1, 32, 256>}, {transform_indices = @transform_1, window_bounds = array<i64: 1, 8, 32>}, {transform_indices = @transform_2, window_bounds = array<i64: 1, 8, 1>}, {transform_indices = @transform_3, window_bounds = array<i64: 1, 8, 256>}]} {
    %c0 = arith.constant 0 : index
    %c0_0 = arith.constant 0 : index
    %c0_1 = arith.constant 0 : index
    %0 = vector.load %arg2[%c0, %c0_0, %c0_1] : memref<1x32x256xf32, #tpu.memory_space<vmem>>, vector<1x32x256xf32>
    %1 = vector.shape_cast %0 : vector<1x32x256xf32> to vector<32x256xf32>
    %c0_2 = arith.constant 0 : index
    %c0_3 = arith.constant 0 : index
    %c0_4 = arith.constant 0 : index
    %2 = vector.load %arg3[%c0_2, %c0_3, %c0_4] : memref<1x8x32xf32, #tpu.memory_space<vmem>>, vector<1x8x32xf32>
    %3 = vector.shape_cast %2 : vector<1x8x32xf32> to vector<8x32xf32>
    %c0_5 = arith.constant 0 : index
    %c0_6 = arith.constant 0 : index
    %c0_7 = arith.constant 0 : index
    %4 = vector.load %arg4[%c0_5, %c0_6, %c0_7] : memref<1x8x1xf32, #tpu.memory_space<vmem>>, vector<1x8x1xf32>
    %5 = vector.shape_cast %4 : vector<1x8x1xf32> to vector<8x1xf32>
    %cst = arith.constant dense<0.000000e+00> : vector<8x256xf32>
    %6 = tpu.matmul %3, %1, %cst {dimension_numbers = #tpu.dot_dimension_numbers<[1], [0], [0], [1], [0, 0, 1, 1], [], []>} : vector<8x32xf32>, vector<32x256xf32>, vector<8x256xf32> -> vector<8x256xf32>
    %7 = vector.broadcast %5 : vector<8x1xf32> to vector<8x256xf32>
    %8 = arith.addf %6, %7 : vector<8x256xf32>
    %c0_8 = arith.constant 0 : index
    %c0_9 = arith.constant 0 : index
    %c0_10 = arith.constant 0 : index
    %9 = vector.load %arg5[%c0_8, %c0_9, %c0_10] : memref<1x8x256xf32, #tpu.memory_space<vmem>>, vector<1x8x256xf32>
    %10 = vector.shape_cast %9 : vector<1x8x256xf32> to vector<8x256xf32>
    %11 = vector.shape_cast %8 : vector<8x256xf32> to vector<1x8x256xf32>
    tpu.vector_store %arg5[%c0_8, %c0_9, %c0_10], %11 {strides = array<i32>} : memref<1x8x256xf32, #tpu.memory_space<vmem>>, vector<1x8x256xf32>,
    return
  }
  func.func @transform_0(%arg0: i32, %arg1: i32) -> (i32, i32, i32) {
    %c0_i32 = arith.constant 0 : i32
    %c0_i32_0 = arith.constant 0 : i32
    return %arg0, %c0_i32, %arg1 : i32, i32, i32
  }
  func.func @transform_1(%arg0: i32, %arg1: i32) -> (i32, i32, i32) {
    %c0_i32 = arith.constant 0 : i32
    %c0_i32_0 = arith.constant 0 : i32
    %c0_i32_1 = arith.constant 0 : i32
    return %arg0, %c0_i32, %c0_i32_0 : i32, i32, i32
  }
  func.func @transform_2(%arg0: i32, %arg1: i32) -> (i32, i32, i32) {
    %c0_i32 = arith.constant 0 : i32
    %c0_i32_0 = arith.constant 0 : i32
    %c0_i32_1 = arith.constant 0 : i32
    return %arg0, %c0_i32, %c0_i32_0 : i32, i32, i32
  }
  func.func @transform_3(%arg0: i32, %arg1: i32) -> (i32, i32, i32) {
    %c0_i32 = arith.constant 0 : i32
    %c0_i32_0 = arith.constant 0 : i32
    return %arg0, %c0_i32, %arg1 : i32, i32, i32
  }
}

</mosaic_0001>

<bundles_post_ra>
// kernel: tpu_custom_call.1
= control target key start
LH: loop header
LB: loop body
LE: loop exit
PB: predicated region body
PF: predicated region fallthrough
CT: control target
= control target key end

     0   :  { %8 = vsyncpa [#allocation3], 0  ;;  %s877_s0 = inlined_call_operand.hbm [shape: f32[2,32,256], index: 0, kind: input, shape index: {}]   ;;  %s878_s1 = inlined_call_operand.vmem [shape: f32[2,8,32], index: 1, kind: input, shape index: {}]   ;;  %s879_s2 = inlined_call_operand.vmem [shape: f32[2,8,1], index: 2, kind: input, shape index: {}]   ;;  %s880_s3 = inlined_call_operand.hbm [shape: f32[2,8,256], index: 3, kind: output, shape index: {}]  }
   0x1   :  { %10 = vsyncpa [#allocation3 + $0x1], 0 }
   0x2   :  { %11 = vsyncpa [#allocation4], 0 }
   0x3   :  { %13 = vsyncpa [#allocation4 + $0x1], 0  ;;  %s695_s12 = smov 0   ;;  %s697_s13 = smov 0  }
   0x4   :  { %s699_s14 = smov 0   ;;  %s701_s15 = smov 0  }
   0x5   :  { %s703_s16 = smov 0   ;;  %s705_s17 = smov 0  }
   0x6 LB: > { %s460_s18 = sadd.s32 4294967295, %s667_s17   ;;  %s461_s19 = sadd.s32 4294967294, %s667_s17   ;;  %s667_s17 = sphi %s705_s17, %s19_s17   ;;  %s663_s16 = sphi %s703_s16, %s895_s16   ;;  %s659_s15 = sphi %s701_s15, %s894_s15   ;;  %s655_s14 = sphi %s699_s14, %s893_s14   ;;  %s651_s13 = sphi %s697_s13, %s892_s13   ;;  %s647_s12 = sphi %s695_s12, %s891_s12  }
   0x7   : > { %s31_s20 = sadd.s32 1, %s663_s16  ;;  %s40_s21 = sadd.s32 1, %s655_s14 }
   0x8   : > { %p33_p0 = scmp.ge.s32.totalorder %s31_s20, 2  ;;  %p47_p1 = scmp.ne.s32.totalorder %s655_s14, %s651_s13 }
   0x9   : > { %p48_p2 = scmp.eq.s32.totalorder %s667_s17, 0  ;;  %p53_p3 = scmp.ne.s32.totalorder %s651_s13, %s647_s12 }
   0xa   : > { %s897_s20 = smov (%p33_p0, %s31_s20), 0  ;;  %p54_p5 = scmp.eq.s32.totalorder %s460_s18, 0 }
   0xb   : > { %p736_p4 = por %p48_p2, %p47_p1  ;;  %s35_s23 = ssub.s32 %s663_s16, %s897_s20 }
   0xc   : > { %p131_p6 = scmp.eq.s32.totalorder %s460_s18, 1  ;;  %p38_p7 = scmp.eq.s32.totalorder %s35_s23, 0 }
   0xd   : > { %p742_p8 = por %p54_p5, %p53_p3  ;;  %p137_p10 = scmp.eq.s32.totalorder %s461_s19, 1 }
   0xe   : > { %p746_p9 = por %p131_p6, %p47_p1  ;;  %p500_p13 = scmp.lt.s32.totalorder %s667_s17, 2 }
   0xf   : > { %s751_s26 = scalar_select %p38_p7, %s655_s14, %s40_s21  }
  0x10   : > { %s884_s25 = scalar_select %p746_p9, 1, 0 }
  0x11   : > { %p753_p11 = por %p137_p10, %p53_p3  ;;  %s157_s28 = sand.u32 1, %s655_s14  }
  0x12   : > { %s464_s29 = sshll.u32 %s157_s28, 6  ;;  %s478_s30 = sshll.u32 %s663_s16, 10 }
  0x13   : > { %s885_s27 = scalar_select %p753_p11, 1, 0 }
  0x14   : > { %s764_s6 = scalar_lea.hbm %s877_s0, %s478_s30  ;;  %s161_s7 = scalar_lea.vmem [#allocation2], %s464_s29 }
  0x15   : > { %s170_s8 = sshll.u32 %s161_s7, 4  ;;  %p770_p0 = pnand %p500_p13, %p736_p4  ;;  %s766_s8 = int_to_ptr.vmem [resolvable:$true] %s170_s8 }
  0x16   : > { %s775_s10 = scalar_lea.sflag [#allocation3], %s157_s28  ;;  %s555_s11 = scalar_lea.hbm %s764_s6, 1024 }
  0x17   : > { %p556_p2 = scmp.ne.s32.totalorder %s764_s6, %s555_s11  ;;  %p557_p3 = pneg %p770_p0 }
  0x18   : > { %s560_s21 = scalar_lea.hbm %s877_s0, 2048  ;;  %p561_p4 = scmp.lt.u32.totalorder %s764_s6, %s877_s0 }
  0x19   : > { %p558_p5 = pnand %p557_p3, %p556_p2  ;;  %p562_p7 = scmp.lt.u32.totalorder %s560_s21, %s555_s11 }
  0x1a   : > { %p564_p13 = scmp.lt.u32.totalorder %s555_s11, %s764_s6 }
  0x1b   : > { %p559_p6 = pneg %p558_p5  ;;  %p563_p10 = por %p562_p7, %p561_p4 }
  0x1d   : > { %p565_p12 = por %p564_p13, %p563_p10 }
  0x1f   : > { %p566_p1 = pnand %p565_p12, %p559_p6 }
  0x21   : > { %569 = shalt.err (!%p566_p1)
}
  0x22   : > { %s570_s28 = scalar_lea.vmem %s766_s8, 1024  ;;  %s669_s29 = smov [#allocation2]  }
  0x23   : > { %p571_p2 = scmp.ne.s32.totalorder %s766_s8, %s570_s28  ;;  %s575_s30 = sshll.u32 %s669_s29, 4  ;;  %s576_s30 = int_to_ptr.vmem [resolvable:$false] %s575_s30 }
  0x24   : > { %s577_s4 = scalar_lea.vmem %s576_s30, 2048  ;;  %p578_p9 = scmp.lt.s32.totalorder %s766_s8, %s576_s30 }
  0x25   : > { %p573_p5 = pnand %p571_p2, %p557_p3  ;;  %p579_p4 = scmp.lt.s32.totalorder %s577_s4, %s570_s28 }
  0x27   : > { %p574_p11 = pneg %p573_p5  ;;  %p580_p7 = por %p579_p4, %p578_p9 }
  0x29   : > { %p581_p10 = pnand %p580_p7, %p574_p11 }
  0x2b   : > { %584 = shalt.err (!%p581_p10)
}
  0x2c   : > { %s670_s5 = smov 256   ;;  %s671_s7 = smov 16  }
  0x2d   : > { %495 = dma.hbm_to_vmem [thread:$0]  (!%p770_p0), %s764_s6, 1024, %s766_s8, %s775_s10, %s670_s5, %s670_s5, %s671_s7  }
  0x2e   : > { %p192_p12 = scmp.lt.s32.totalorder %s667_s17, 3  ;;  %p887_p1 = scmp.ge.s32.totalorder %s667_s17, 1 }
  0x30   : > { %p193_p3 = pnand %p887_p1, %p192_p12 }
  0x31   : > { %s807_s11 = sand.u32 (!%p193_p3), 1, %s651_s13  }
  0x32   : > { %196 = sbr.rel (%p193_p3) target bundleno = 298 (0x12a), region = 32  ;;  %s468_s18 = sshll.u32 (!%p193_p3), %s807_s11, 6 }
  0x33   : > { %s199_s19 = scalar_lea.sflag (!%p193_p3), [#allocation3], %s807_s11  ;;  %s202_s21 = scalar_lea.vmem (!%p193_p3), [#allocation2], %s468_s18 }
  0x39   : > { %638 = dma.done.wait (%p742_p8), %s199_s19, 1024  }
  0x3a   : > { %640 = vsyncadd (%p742_p8), %s199_s19, 4294966272  ;;  %p234_p9 = scmp.lt.s32.totalorder %s659_s15, 1  ;;  %v672_v0 = vmov 0.0   ;;  %v673_v1 = vmov 0   ;;  %v244_v2 = vld [vmem:[%s202_s21 + $0x8] sm:$0xff]  ;;  %v246_v3 = vld [vmem:[%s202_s21 + $0x18] sm:$0xff] }
  0x3b   : > { %326 = vmatprep.mubr.f32.mxu0 %v672_v0  ;;  %554 = vset.pattern.permute.xlu0 %v673_v1  ;;  %v243_v4 = vld [vmem:[%s202_s21] sm:$0xff]  ;;  %v480_v5 = vpack.c.bf16 %v246_v3, %v244_v2  ;;  %v245_v6 = vld [vmem:[%s202_s21 + $0x10] sm:$0xff]  ;;  %v248_v7 = vld [vmem:[%s202_s21 + $0x28] sm:$0xff]  ;;  %vm258_vm0 = vcmask 261120   ;;  %s469_s29 = sshll.u32 %s807_s11, 4  ;;  %s479_s30 = sshll.u32 %s659_s15, 8 }
  0x3c   : > { %s235_s6 = scalar_select %p234_p9, %s659_s15, 1  ;;  %v250_v8 = vld [vmem:[%s202_s21 + $0x38] sm:$0xff]  ;;  %v482_v9 = vpack.c.bf16 %v245_v6, %v243_v4  ;;  %v247_v11 = vld [vmem:[%s202_s21 + $0x20] sm:$0xff]  ;;  %v249_v12 = vld [vmem:[%s202_s21 + $0x30] sm:$0xff] }
  0x3d   : > { %v484_v10 = vpack.c.bf16 %v250_v8, %v248_v7  ;;  %481 = vmatprep.subr.bf16.mxu0 %v480_v5  ;;  %v486_v14 = vpack.c.bf16 %v249_v12, %v247_v11  ;;  %s232_s4 = scalar_lea.vmem [#allocation5], %s469_s29  ;;  %s828_s19 = scalar_lea.hbm %s880_s3, %s479_s30 }
  0x3e   : > { %s470_s8 = sshll.u32 %s235_s6, 3  ;;  %483 = vmatpush1.bf16.msra.mxu0 %v482_v9  ;;  %s352_s5 = sshll.u32 %s232_s4, 4  ;;  %s830_s5 = int_to_ptr.vmem [resolvable:$true] %s352_s5 }
  0x3f   : > { %s241_s22 = scalar_lea.vmem %s879_s2, %s470_s8  ;;  %485 = vmatprep.subr.bf16.mxu0 %v484_v10  ;;  %s237_s28 = scalar_lea.vmem %s878_s1, %s470_s8 }
  0x40   : > { %v252_v13 = vld [vmem:[%s241_s22] sm:$0xff]  ;;  %s336_s21 = scalar_lea.sflag [#allocation4], %s807_s11  ;;  %s585_s15 = scalar_lea.vmem %s830_s5, 256 }
  0x41   : > { %255 = vperm.xlu0 %554, %v252_v13   ;;  %v251_v15 = vld [vmem:[%s237_s28] sm:$0xff]  ;;  %p586_p8 = scmp.ne.s32.totalorder %s830_s5, %s585_s15  ;;  %p888_p11 = scmp.ne.s32.totalorder %s884_s25, 0 }
  0x42   : > { %487 = vmatpush1.bf16.msra.mxu0 %v486_v14  ;;  %s674_s6 = smov [#allocation5]  }
  0x43   : > { %p587_p0 = pnand %p586_p8, %p888_p11  ;;  %s589_s8 = sshll.u32 %s674_s6, 4  ;;  %s590_s8 = int_to_ptr.vmem [resolvable:$false] %s589_s8 }
  0x44   : > { %s591_s9 = scalar_lea.vmem %s590_s8, 512  ;;  %p592_p13 = scmp.lt.s32.totalorder %s830_s5, %s590_s8 }
  0x45   : > { %472 = vmatmul.mubr.msk.f32.vlgmr.msra.gmra.mrb[0].mxu0 %vm258_vm0, %v251_v15  ;;  %p588_p6 = pneg %p587_p0  ;;  %p593_p2 = scmp.lt.s32.totalorder %s591_s9, %s585_s15 }
  0x47   : > { %p594_p5 = por %p593_p2, %p592_p13 }
  0x49   : > { %p595_p4 = pnand %p594_p5, %p588_p6 }
  0xc0   : > { %v256_v16 = vpop.permute.xlu0 %255 }
 0x118   : > { %v328_v17 = vpop.f32.mrb[0].mxu0 }
 0x119   : > { %v329_v18 = vadd.f32 %v328_v17, %v256_v16  ;;  %v330_v19 = vpop.f32.mrb[1].mxu0 }
 0x11a   : > { %v331_v20 = vadd.f32 %v330_v19, %v256_v16 }
 0x11b   : > { %333 = vst [vmem:[%s232_s4] sm:$0xff] %v329_v18 }
 0x11c   : > { %334 = vst [vmem:[%s232_s4 + $0x8] sm:$0xff] %v331_v20 }
 0x11d   : > { %598 = shalt.err (!%p595_p4)
}
 0x11e   : > { %s599_s11 = scalar_lea.hbm %s828_s19, 256  ;;  %s603_s24 = scalar_lea.hbm %s880_s3, 512 }
 0x11f   : > { %p600_p7 = scmp.ne.s32.totalorder %s828_s19, %s599_s11  ;;  %p604_p1 = scmp.lt.u32.totalorder %s828_s19, %s880_s3 }
 0x120   : > { %p605_p3 = scmp.lt.u32.totalorder %s603_s24, %s599_s11  ;;  %p607_p8 = scmp.lt.u32.totalorder %s599_s11, %s828_s19 }
 0x121   : > { %p601_p10 = pnand %p600_p7, %p888_p11 }
 0x122   : > { %p606_p9 = por %p605_p3, %p604_p1 }
 0x123   : > { %p602_p12 = pneg %p601_p10 }
 0x124   : > { %p608_p0 = por %p607_p8, %p606_p9 }
 0x126   : > { %p609_p6 = pnand %p608_p0, %p602_p12 }
 0x128   : > { %612 = shalt.err (!%p609_p6)
}
 0x129   : > { %490 = dma.vmem_to_hbm [thread:$0]  (%p888_p11), %s830_s5, 256, %s828_s19, %s336_s21  }
 0x12a PF: > { %s364_s29 = sand.u32 1, %s647_s12   ;;  %p889_p13 = scmp.ne.s32.totalorder %s885_s27, 0 }
 0x12b   : > { %p890_p2 = scmp.ge.s32.totalorder %s667_s17, 2  ;;  %s365_s30 = scalar_lea.sflag [#allocation4], %s364_s29 }
 0x12d   : > { %p497_p5 = pnand %p890_p2, %p889_p13 }
 0x12f   : > { %642 = dma.done.wait (!%p497_p5), %s365_s30, 256  }
 0x130   : > { %644 = vsyncadd (!%p497_p5), %s365_s30, 4294967040  ;;  %s19_s17 = sadd.s32 1, %s667_s17   ;;  %s891_s12 = smov %s651_s13 }
 0x131   : > { %p16_p4 = scmp.ge.s32.totalorder %s19_s17, 4   ;;  %s892_s13 = smov %s655_s14 }
 0x132   : > { %s893_s14 = smov %s751_s26  ;;  %s894_s15 = smov %s663_s16 }
 0x133   : > { %s895_s16 = smov %s897_s20  ;;  %18 = sbr.rel (!%p16_p4) target bundleno = 6 (0x6), region = 83 }
 0x13a   :  { %370 = vsyncpa [#allocation3], 1 }
 0x13b   :  { %372 = vsyncpa [#allocation3 + $0x1], 1 }
 0x13c   :  { %373 = vsyncpa [#allocation4], 1 }
 0x13d   :  { %375 = vsyncpa [#allocation4 + $0x1], 1 }

</bundles_post_ra>
